<compile_context>
chip_gen: v7x
topology: tpu7x:2x2x1
jax: 0.10.0
libtpu: 0.0.40
codegen_flags: <defaults>
</compile_context>

<pallas_src>
import jax
import jax.numpy as jnp
from jax.experimental import pallas as pl
from jax.experimental.pallas import tpu as pltpu

GEM_P = 3.0     # fixed: RsnaModel uses GeM(p_trainable=False) -> p = 3
GEM_EPS = 1e-6


def rsna_kernel(x_ref, wbt_ref, wh_ref, bh_ref, out_ref):
    # x_ref:   (Bt, Cin, HW) f32 -- NCHW with H,W flattened (no host transpose)
    # wbt_ref: (Cf, Cin)     f32 -- stand-in backbone 1x1 weights, pre-transposed
    # wh_ref:  (Cf, NC)      f32 -- head weights (in_features x out_features)
    # bh_ref:  (1, NC)       f32 -- head bias
    # out_ref: (1, Bt, NC)   f32 -- logits for this batch block (single store)
    Bt, Cin, HW = x_ref.shape
    Cf = wbt_ref.shape[0]

    wbt = wbt_ref[...]                                   # (Cf, Cin) f32
    wh = wh_ref[...]                                     # (Cf, NC)  f32

    # ---- fold the Bt samples of this block into ONE MXU call ----
    x = x_ref[...]                                       # (Bt, Cin, HW)
    if Bt == 1:
        x_t = x[0]                                       # (Cin, HW), no movement
    else:
        # leading-dim transpose of tiny (Bt, Cin) dims; HW stays on lanes.
        x_t = jnp.transpose(x, (1, 0, 2)).reshape(Cin, Bt * HW)

    # stand-in backbone: pointwise projection, full-f32 MXU passes.
    feats = jnp.dot(wbt, x_t,
                    precision=jax.lax.Precision.HIGHEST,
                    preferred_element_type=jnp.float32)  # (Cf, Bt*HW) f32

    # ---- GeM pooling (all f32, VPU + lane reduce; no MXU precision issue) ----
    clamped = jnp.maximum(feats, GEM_EPS)
    powed = clamped * clamped * clamped                  # p = 3 exactly
    if Bt == 1:
        pooled_p = jnp.mean(powed, axis=-1, keepdims=True)          # (Cf, 1)
    else:
        pooled_p = jnp.mean(powed.reshape(Cf, Bt, HW), axis=-1)     # (Cf, Bt)
    pooled = jnp.power(pooled_p, 1.0 / GEM_P)            # (Cf, Bt)

    # ---- linear head on the VPU (skinny (Bt,Cf)@(Cf,NC) not worth the MXU) ----
    if Bt == 1:
        logits = jnp.sum(pooled * wh, axis=0, keepdims=True)            # (1, NC)
    else:
        logits = jnp.sum(pooled[:, :, None] * wh[:, None, :], axis=0)   # (Bt, NC)

    # direct store of the whole block (no concatenate of sub-vreg rows).
    out_ref[...] = (logits + bh_ref[...])[None].astype(out_ref.dtype)


def rsna_forward(x_nchw, w_backbone, w_head, b_head, *, bt=1):
    """x_nchw: (B, Cin, H, W) f32 -> logits (B, n_classes) f32.

    bt = samples per grid step.  Default 1: grid=(B,) marked "parallel" so
    v7x's two TensorCores each take half the batch (no-op on v5e/v6e).
    """
    B, Cin, H, W = x_nchw.shape
    HW = H * W
    Cf = w_backbone.shape[1]
    NC = w_head.shape[1]
    assert B % bt == 0
    nb = B // bt

    # NCHW -> (B, Cin, HW): pure reshape of contiguous dims; x stays f32
    # (no wrapper-side cast => no extra HBM pass, faithful numerics).
    x_flat = x_nchw.reshape(B, Cin, HW)
    wbt = jnp.transpose(w_backbone).astype(jnp.float32)      # (Cf, Cin), tiny
    w_head_f32 = w_head.astype(jnp.float32)
    b_head2d = b_head.reshape(1, NC).astype(jnp.float32)

    out3 = pl.pallas_call(
        rsna_kernel,
        # 3-D output so the block's last two dims equal the full array dims.
        out_shape=jax.ShapeDtypeStruct((nb, bt, NC), jnp.float32),
        grid_spec=pltpu.PrefetchScalarGridSpec(
            num_scalar_prefetch=0,
            grid=(nb,),
            in_specs=[
                pl.BlockSpec((bt, Cin, HW), lambda i: (i, 0, 0)),
                pl.BlockSpec((Cf, Cin), lambda i: (0, 0)),
                pl.BlockSpec((Cf, NC), lambda i: (0, 0)),
                pl.BlockSpec((1, NC), lambda i: (0, 0)),
            ],
            out_specs=pl.BlockSpec((1, bt, NC), lambda i: (i, 0, 0)),
        ),
        compiler_params=pltpu.CompilerParams(
            dimension_semantics=("parallel",)),
    )(x_flat, wbt, w_head_f32, b_head2d)
    return out3.reshape(B, NC)


def reference_forward(x_nchw, w_backbone, w_head, b_head):
    """Pure-JAX f32 reference mirroring the PyTorch module's math."""
    B, Cin, H, W = x_nchw.shape
    x = x_nchw.reshape(B, Cin, H * W)
    feats = jnp.einsum("cf,bcs->bfs", w_backbone, x,
                       precision=jax.lax.Precision.HIGHEST)       # (B, Cf, HW)
    clamped = jnp.maximum(feats, GEM_EPS)
    pooled = jnp.mean(clamped ** GEM_P, axis=-1) ** (1.0 / GEM_P)  # (B, Cf)
    head = jnp.dot(pooled, w_head, precision=jax.lax.Precision.HIGHEST)
    return head + b_head


if __name__ == "__main__":
    # Small shapes consistent with the module:
    #  batch=2, in_channels=4, spatial=16x16, backbone feature dim=32,
    #  n_classes=4 (cfg.classes has 4 entries).
    B, Cin, H, W = 2, 4, 16, 16
    Cf, NC = 32, 4

    key = jax.random.PRNGKey(0)
    kx, kwb, kwh, kbh = jax.random.split(key, 4)

    x = jax.random.normal(kx, (B, Cin, H, W), dtype=jnp.float32)
    # Deterministic parameter init (synthetic weights, not a checkpoint).
    w_backbone = jax.random.normal(kwb, (Cin, Cf), dtype=jnp.float32) * 0.1
    w_head = jax.random.normal(kwh, (Cf, NC), dtype=jnp.float32) * 0.1
    b_head = jax.random.normal(kbh, (NC,), dtype=jnp.float32) * 0.01

    logits = jax.block_until_ready(rsna_forward(x, w_backbone, w_head, b_head))
    ref = reference_forward(x, w_backbone, w_head, b_head)

    assert logits.shape == (B, NC)
    assert jnp.allclose(logits, ref, atol=1e-4, rtol=1e-4), (logits, ref)
    print("KERNEL_OK")
</pallas_src>

<mosaic_0001>
module attributes {stable_mosaic.version = 11 : i64} {
  func.func @rsna_kernel(%arg0: i32, %arg1: memref<1x4x256xf32, #tpu.memory_space<vmem>>, %arg2: memref<32x4xf32, #tpu.memory_space<vmem>>, %arg3: memref<32x4xf32, #tpu.memory_space<vmem>>, %arg4: memref<1x4xf32, #tpu.memory_space<vmem>>, %arg5: memref<1x1x4xf32, #tpu.memory_space<vmem>>) attributes {dimension_semantics = [#tpu.dimension_semantics<parallel>], iteration_bounds = array<i64: 2>, scalar_prefetch = 0 : i64, scratch_operands = 0 : i64, tpu.core_type = #tpu.core_type<tc>, window_params = [{transform_indices = @transform_0, window_bounds = array<i64: 1, 4, 256>}, {pipeline_mode = #tpu.pipeline_mode<synchronous>, transform_indices = @transform_1, window_bounds = array<i64: 32, 4>}, {pipeline_mode = #tpu.pipeline_mode<synchronous>, transform_indices = @transform_2, window_bounds = array<i64: 32, 4>}, {pipeline_mode = #tpu.pipeline_mode<synchronous>, transform_indices = @transform_3, window_bounds = array<i64: 1, 4>}, {transform_indices = @transform_4, window_bounds = array<i64: 1, 1, 4>}]} {
    %c0 = arith.constant 0 : index
    %c0_0 = arith.constant 0 : index
    %0 = vector.load %arg2[%c0, %c0_0] : memref<32x4xf32, #tpu.memory_space<vmem>>, vector<32x4xf32>
    %c0_1 = arith.constant 0 : index
    %c0_2 = arith.constant 0 : index
    %1 = vector.load %arg3[%c0_1, %c0_2] : memref<32x4xf32, #tpu.memory_space<vmem>>, vector<32x4xf32>
    %c0_3 = arith.constant 0 : index
    %c0_4 = arith.constant 0 : index
    %c0_5 = arith.constant 0 : index
    %2 = vector.load %arg1[%c0_3, %c0_4, %c0_5] : memref<1x4x256xf32, #tpu.memory_space<vmem>>, vector<1x4x256xf32>
    %3 = vector.shape_cast %2 : vector<1x4x256xf32> to vector<4x256xf32>
    %cst = arith.constant dense<0.000000e+00> : vector<32x256xf32>
    %4 = tpu.matmul %0, %3, %cst {dimension_numbers = #tpu.dot_dimension_numbers<[1], [0], [0], [1], [0, 0, 1, 1], [], []>, precision = #tpu.contract_precision<fp32>} : vector<32x4xf32>, vector<4x256xf32>, vector<32x256xf32> -> vector<32x256xf32>
    %cst_6 = arith.constant 9.99999997E-7 : f32
    %5 = vector.broadcast %cst_6 : f32 to vector<32x256xf32>
    %6 = arith.maximumf %4, %5 : vector<32x256xf32>
    %7 = arith.mulf %6, %6 : vector<32x256xf32>
    %8 = arith.mulf %7, %6 : vector<32x256xf32>
    %cst_7 = arith.constant dense<0.000000e+00> : vector<32xf32>
    %9 = vector.multi_reduction <add>, %8, %cst_7 [1] : vector<32x256xf32> to vector<32xf32>
    %10 = vector.shape_cast %9 : vector<32xf32> to vector<32x1xf32>
    %cst_8 = arith.constant 2.560000e+02 : f32
    %11 = vector.broadcast %cst_8 : f32 to vector<32x1xf32>
    %12 = arith.divf %10, %11 : vector<32x1xf32>
    %cst_9 = arith.constant 0.333333343 : f32
    %13 = vector.broadcast %cst_9 : f32 to vector<32x1xf32>
    %14 = math.powf %12, %13 : vector<32x1xf32>
    %15 = vector.broadcast %14 : vector<32x1xf32> to vector<32x4xf32>
    %16 = arith.mulf %15, %1 : vector<32x4xf32>
    %cst_10 = arith.constant dense<0.000000e+00> : vector<4xf32>
    %17 = vector.multi_reduction <add>, %16, %cst_10 [0] : vector<32x4xf32> to vector<4xf32>
    %18 = vector.shape_cast %17 : vector<4xf32> to vector<1x4xf32>
    %c0_11 = arith.constant 0 : index
    %c0_12 = arith.constant 0 : index
    %19 = vector.load %arg4[%c0_11, %c0_12] : memref<1x4xf32, #tpu.memory_space<vmem>>, vector<1x4xf32>
    %20 = arith.addf %18, %19 : vector<1x4xf32>
    %21 = vector.shape_cast %20 : vector<1x4xf32> to vector<1x1x4xf32>
    %c0_13 = arith.constant 0 : index
    %c0_14 = arith.constant 0 : index
    %c0_15 = arith.constant 0 : index
    %22 = vector.load %arg5[%c0_13, %c0_14, %c0_15] : memref<1x1x4xf32, #tpu.memory_space<vmem>>, vector<1x1x4xf32>
    tpu.vector_store %arg5[%c0_13, %c0_14, %c0_15], %21 {strides = array<i32>} : memref<1x1x4xf32, #tpu.memory_space<vmem>>, vector<1x1x4xf32>,
    return
  }
  func.func @transform_0(%arg0: i32) -> (i32, i32, i32) {
    %c0_i32 = arith.constant 0 : i32
    %c0_i32_0 = arith.constant 0 : i32
    %c0_i32_1 = arith.constant 0 : i32
    return %arg0, %c0_i32, %c0_i32_0 : i32, i32, i32
  }
  func.func @transform_1(%arg0: i32) -> (i32, i32) {
    %c0_i32 = arith.constant 0 : i32
    %c0_i32_0 = arith.constant 0 : i32
    %c0_i32_1 = arith.constant 0 : i32
    return %c0_i32, %c0_i32_0 : i32, i32
  }
  func.func @transform_2(%arg0: i32) -> (i32, i32) {
    %c0_i32 = arith.constant 0 : i32
    %c0_i32_0 = arith.constant 0 : i32
    %c0_i32_1 = arith.constant 0 : i32
    return %c0_i32, %c0_i32_0 : i32, i32
  }
  func.func @transform_3(%arg0: i32) -> (i32, i32) {
    %c0_i32 = arith.constant 0 : i32
    %c0_i32_0 = arith.constant 0 : i32
    %c0_i32_1 = arith.constant 0 : i32
    return %c0_i32, %c0_i32_0 : i32, i32
  }
  func.func @transform_4(%arg0: i32) -> (i32, i32, i32) {
    %c0_i32 = arith.constant 0 : i32
    %c0_i32_0 = arith.constant 0 : i32
    %c0_i32_1 = arith.constant 0 : i32
    return %arg0, %c0_i32, %c0_i32_0 : i32, i32, i32
  }
}

</mosaic_0001>

<bundles_post_ra>
// kernel: tpu_custom_call.1
= control target key start
LH: loop header
LB: loop body
LE: loop exit
PB: predicated region body
PF: predicated region fallthrough
CT: control target
= control target key end

     0   :  { %9 = vsyncpa [#allocation3], 0  ;;  %s1469_s0 = inlined_call_operand.vmem [shape: f32[2,4,256], index: 0, kind: input, shape index: {}]   ;;  %s1470_s1 = inlined_call_operand.vmem [shape: f32[32,4], index: 1, kind: input, shape index: {}]   ;;  %s1471_s2 = inlined_call_operand.vmem [shape: f32[32,4], index: 2, kind: input, shape index: {}]   ;;  %s1472_s3 = inlined_call_operand.vmem [shape: f32[1,4], index: 3, kind: input, shape index: {}]   ;;  %s1473_s4 = inlined_call_operand.hbm [shape: f32[2,1,4], index: 4, kind: output, shape index: {}]  }
   0x1   :  { %11 = vsyncpa [#allocation3 + $0x1], 0  ;;  %s1240_s15 = smov 0   ;;  %s1242_s16 = smov 0  }
   0x2   :  { %s1244_s17 = smov 0   ;;  %s1246_s18 = smov 0  }
   0x3 LB: > { %s1261_s19 = sadd.s32 4294967295, %s1211_s18   ;;  %s970_s20 = sadd.s32 4294967294, %s1211_s18   ;;  %s1211_s18 = sphi %s1246_s18, %s1479_s18   ;;  %s1207_s17 = sphi %s1244_s17, %s1478_s17   ;;  %s1203_s16 = sphi %s1242_s16, %s1477_s16   ;;  %s1199_s15 = sphi %s1240_s15, %s1476_s15  }
   0x4   : > { %s1265_s21 = sadd.s32 1, %s1211_s18   ;;  %s113_s22 = sadd.s32 1, %s1207_s17 }
   0x5   : > { %s110_s23 = ssub.s32 %s1211_s18, %s1265_s21  ;;  %p123_p0 = scmp.ne.s32.totalorder %s1207_s17, %s1203_s16 }
   0x6   : > { %p111_p1 = scmp.eq.s32.totalorder %s110_s23, 0  ;;  %p124_p2 = scmp.eq.s32.totalorder %s1261_s19, 1 }
   0x7   : > { %p129_p3 = scmp.ne.s32.totalorder %s1203_s16, %s1199_s15  ;;  %p130_p4 = scmp.eq.s32.totalorder %s970_s20, 1 }
   0x8   : > { %s1276_s24 = scalar_select %p111_p1, %s1207_s17, %s113_s22  }
   0x9   : > { %p1278_p5 = por %p124_p2, %p123_p0  ;;  %p1282_p6 = por %p130_p4, %p129_p3 }
   0xa   : > { %p973_p7 = scmp.ge.s32.totalorder %s1211_s18, 1  ;;  %p165_p8 = scmp.lt.s32.totalorder %s1211_s18, 3 }
   0xc   : > { %p166_p9 = pnand %p973_p7, %p165_p8 }
   0xd   : > { %p190_p10 = scmp.lt.s32.totalorder (!%p166_p9), %s1261_s19, 1  ;;  %v195_v0 = vld [vmem:[%s1470_s1] sm:$0xff] (!%p166_p9)  ;;  %vm206_vm0 = vcmask (!%p166_p9), 31744   ;;  %v196_v1 = vld [vmem:[%s1470_s1 + $0x8] sm:$0xff] (!%p166_p9)  ;;  %v1213_v2 = vmov (!%p166_p9), 0.0   ;;  %v197_v5 = vld [vmem:[%s1470_s1 + $0x10] sm:$0xff] (!%p166_p9) }
   0xe   : > { %169 = sbr.rel (%p166_p9) target bundleno = 512 (0x200), region = 36  ;;  %290 = vmatprep.mubr.f32.mxu1 (!%p166_p9), %v1213_v2  ;;  %605 = vmatprep.mubr.f32.mxu0 (!%p166_p9), %v1213_v2  ;;  %v208_v3 = vsel (!%p166_p9), %vm206_vm0, %v195_v0, 0  ;;  %v211_v4 = vsel (!%p166_p9), %vm206_vm0, %v196_v1, 0  ;;  %v198_v6 = vld [vmem:[%s1470_s1 + $0x18] sm:$0xff] (!%p166_p9)  ;;  %v214_v9 = vsel (!%p166_p9), %vm206_vm0, %v197_v5, 0  ;;  %vm219_vm1 = vcmask (!%p166_p9), 1043456  }
   0xf   : > { %v1306_v7 = vand.u32 (!%p166_p9), 4294901760, %v208_v3  ;;  %v1308_v8 = vand.u32 (!%p166_p9), 4294901760, %v211_v4  ;;  %v217_v10 = vsel (!%p166_p9), %vm206_vm0, %v198_v6, 0  ;;  %v1312_v11 = vand.u32 (!%p166_p9), 4294901760, %v214_v9  ;;  %s188_s5 = sand.u32 (!%p166_p9), 1, %s1203_s16   ;;  %s976_s8 = sshll.u32 (!%p166_p9), %s1261_s19, 4 }
  0x10   : > { %v1326_v15 = vand.u32 (!%p166_p9), 4294901760, %v217_v10  ;;  %s903_s14 = scalar_lea.sflag (!%p166_p9), [#allocation3], %s188_s5 }
  0x11   : > { %v1315_v12 = vsub.f32 (!%p166_p9), %v208_v3, %v1306_v7  ;;  %v1318_v13 = vsub.f32 (!%p166_p9), %v211_v4, %v1308_v8  ;;  %v1324_v14 = vsub.f32 (!%p166_p9), %v214_v9, %v1312_v11 }
  0x12   : > { %v1333_v25 = vsub.f32 (!%p166_p9), %v217_v10, %v1326_v15 }
  0x13   : > { %v293_v17 = vand.u32 (!%p166_p9), 4294901760, %v1315_v12  ;;  %v304_v18 = vand.u32 (!%p166_p9), 4294901760, %v1318_v13  ;;  %v315_v24 = vand.u32 (!%p166_p9), 4294901760, %v1324_v14 }
  0x14   : > { %v326_v32 = vand.u32 (!%p166_p9), 4294901760, %v1333_v25 }
  0x15   : > { %s191_s9 = scalar_select %p190_p10, %s1261_s19, 1  ;;  %v294_v22 = vsub.f32 %v1315_v12, %v293_v17  ;;  %v305_v29 = vsub.f32 %v1318_v13, %v304_v18  ;;  %v316_v36 = vsub.f32 %v1324_v14, %v315_v24 }
  0x16   : > { %v327_v41 = vsub.f32 %v1333_v25, %v326_v32  ;;  %s1214_s19 = smov [#allocation2]  }
  0x17   : > { %s979_s10 = sshll.u32 %s191_s9, 3  ;;  %v295_v28 = vand.u32 4294901760, %v294_v22  ;;  %v306_v33 = vand.u32 4294901760, %v305_v29  ;;  %v317_v40 = vand.u32 4294901760, %v316_v36  ;;  %s189_s9 = scalar_lea.vmem [#allocation2], %s188_s5 }
  0x18   : > { %s194_s13 = scalar_lea.vmem %s1469_s0, %s979_s10  ;;  %v328_v42 = vand.u32 4294901760, %v327_v41  ;;  %s915_s10 = sshll.u32 %s189_s9, 4  ;;  %s1429_s10 = int_to_ptr.vmem [resolvable:$true] %s915_s10 }
  0x19   : > { %v203_v16 = vld [vmem:[%s194_s13] sm:$0xff]  ;;  %s1427_s13 = scalar_lea.hbm %s1473_s4, %s976_s8  ;;  %s1149_s20 = scalar_lea.vmem %s1429_s10, 16 }
  0x1a   : > { %v205_v19 = vcombine.high %v203_v16, %v203_v16  ;;  %v220_v20 = vsel %vm219_vm1, %v203_v16, 0  ;;  %p1150_p11 = scmp.ne.s32.totalorder %s1429_s10, %s1149_s20  ;;  %s1153_s22 = sshll.u32 %s1214_s19, 4  ;;  %s1154_s22 = int_to_ptr.vmem [resolvable:$false] %s1153_s22 }
  0x1b   : > { %v226_v21 = vand.u32 4294901760, %v220_v20  ;;  %s1155_s23 = scalar_lea.vmem %s1154_s22, 32  ;;  %p1156_p0 = scmp.lt.s32.totalorder %s1429_s10, %s1154_s22 }
  0x1c   : > { %v222_v23 = vsel %vm219_vm1, %v205_v19, 0  ;;  %p1151_p12 = pnand %p1150_p11, %p1278_p5  ;;  %p1157_p1 = scmp.lt.s32.totalorder %s1155_s23, %s1149_s20 }
  0x1d   : > { %v224_v26 = vand.u32 4294901760, %v222_v23  ;;  %v342_v27 = vsub.f32 %v220_v20, %v226_v21 }
  0x1e   : > { %p1152_p13 = pneg %p1151_p12  ;;  %p1158_p2 = por %p1157_p1, %p1156_p0 }
  0x1f   : > { %225 = vmatprep.subr.mxu1 %v224_v26  ;;  %540 = vmatprep.subr.mxu0 %v224_v26  ;;  %v336_v30 = vsub.f32 %v222_v23, %v224_v26  ;;  %v343_v31 = vand.u32 4294901760, %v342_v27 }
  0x20   : > { %227 = vmatpush1.msra.mxu1 %v226_v21  ;;  %542 = vmatpush1.msra.mxu0 %v226_v21  ;;  %p1159_p3 = pnand %p1158_p2, %p1152_p13 }
  0x21   : > { %296 = vmatmul.mubr.f32.vlgmr.msra.gmra.mrb[0].mxu1 %v295_v28  ;;  %609 = vmatmul.mubr.f32.vlgmr.msra.gmra.mrb[0].mxu0 %v293_v17  ;;  %v337_v34 = vand.u32 4294901760, %v336_v30  ;;  %v344_v35 = vsub.f32 %v342_v27, %v343_v31 }
  0x22   : > { %301 = vmatprep.mubr.f32.mxu1 %v1213_v2  ;;  %614 = vmatprep.mubr.f32.mxu0 %v1213_v2 }
  0x23   : > { %v338_v37 = vsub.f32 %v336_v30, %v337_v34  ;;  %645 = vmatprep.subr.mxu0 %v337_v34  ;;  %v345_v38 = vand.u32 4294901760, %v344_v35 }
  0x24   : > { %649 = vmatpush1.msra.mxu0 %v343_v31 }
  0x25   : > { %307 = vmatmul.mubr.f32.gmra.mrb[2].mxu1 %v306_v33  ;;  %618 = vmatmul.mubr.f32.gmra.mrb[2].mxu0 %v304_v18  ;;  %v339_v39 = vand.u32 4294901760, %v338_v37 }
  0x26   : > { %312 = vmatprep.mubr.f32.mxu1 %v1213_v2  ;;  %623 = vmatprep.mubr.f32.mxu0 %v1213_v2 }
  0x27   : > { %340 = vmatprep.subr.mxu1 %v339_v39  ;;  %742 = vmatprep.subr.mxu0 %v224_v26 }
  0x28   : > { %346 = vmatpush1.msra.mxu1 %v345_v38 }
  0x29   : > { %318 = vmatmul.mubr.f32.gmra.mrb[4].mxu1 %v317_v40  ;;  %627 = vmatmul.mubr.f32.gmra.mrb[4].mxu0 %v315_v24 }
  0x2a   : > { %323 = vmatprep.mubr.f32.mxu1 %v1213_v2  ;;  %632 = vmatprep.mubr.f32.mxu0 %v1213_v2 }
  0x2b   : > { %440 = vmatprep.subr.mxu1 %v336_v30 }
  0x2d   : > { %329 = vmatmul.mubr.f32.gmra.mrb[6].mxu1 %v328_v42  ;;  %636 = vmatmul.mubr.f32.gmra.mrb[6].mxu0 %v326_v32 }
  0x2e   : > { %409 = vmatprep.mubr.f32.mxu1 %v1213_v2  ;;  %712 = vmatprep.mubr.f32.mxu0 %v1213_v2 }
  0x31   : > { %411 = vmatmul.mubr.f32.vlgmr.msra.gmra.mrb[0].mxu1 %v1306_v7  ;;  %714 = vmatmul.mubr.f32.vlgmr.msra.gmra.mrb[0].mxu0 %v1306_v7 }
  0x32   : > { %416 = vmatprep.mubr.f32.mxu1 %v1213_v2  ;;  %719 = vmatprep.mubr.f32.mxu0 %v1213_v2 }
  0x33   : > { %443 = vmatpush1.msra.mxu1 %v342_v27  ;;  %744 = vmatpush1.msra.mxu0 %v226_v21 }
  0x35   : > { %418 = vmatmul.mubr.f32.gmra.mrb[2].mxu1 %v1308_v8  ;;  %721 = vmatmul.mubr.f32.gmra.mrb[2].mxu0 %v1308_v8 }
  0x36   : > { %423 = vmatprep.mubr.f32.mxu1 %v1213_v2  ;;  %726 = vmatprep.mubr.f32.mxu0 %v1213_v2 }
  0x39   : > { %425 = vmatmul.mubr.f32.gmra.mrb[4].mxu1 %v1312_v11  ;;  %728 = vmatmul.mubr.f32.gmra.mrb[4].mxu0 %v1312_v11 }
  0x3a   : > { %430 = vmatprep.mubr.f32.mxu1 %v1213_v2  ;;  %733 = vmatprep.mubr.f32.mxu0 %v1213_v2 }
  0x3d   : > { %432 = vmatmul.mubr.f32.gmra.mrb[6].mxu1 %v1326_v15  ;;  %735 = vmatmul.mubr.f32.gmra.mrb[6].mxu0 %v1326_v15 }
  0x3e   : > { %506 = vmatprep.mubr.f32.mxu1 %v1213_v2  ;;  %807 = vmatprep.mubr.f32.mxu0 %v1213_v2 }
  0x41   : > { %509 = vmatmul.mubr.f32.vlgmr.msra.gmra.mrb[0].mxu1 %v1315_v12  ;;  %809 = vmatmul.mubr.f32.vlgmr.msra.gmra.mrb[0].mxu0 %v1306_v7 }
  0x42   : > { %514 = vmatprep.mubr.f32.mxu1 %v1213_v2  ;;  %814 = vmatprep.mubr.f32.mxu0 %v1213_v2 }
  0x45   : > { %517 = vmatmul.mubr.f32.gmra.mrb[2].mxu1 %v1318_v13  ;;  %816 = vmatmul.mubr.f32.gmra.mrb[2].mxu0 %v1308_v8 }
  0x46   : > { %522 = vmatprep.mubr.f32.mxu1 %v1213_v2  ;;  %821 = vmatprep.mubr.f32.mxu0 %v1213_v2 }
  0x49   : > { %525 = vmatmul.mubr.f32.gmra.mrb[4].mxu1 %v1324_v14  ;;  %823 = vmatmul.mubr.f32.gmra.mrb[4].mxu0 %v1312_v11 }
  0x4a   : > { %530 = vmatprep.mubr.f32.mxu1 %v1213_v2  ;;  %828 = vmatprep.mubr.f32.mxu0 %v1213_v2 }
  0x4d   : > { %533 = vmatmul.mubr.f32.gmra.mrb[6].mxu1 %v1333_v25  ;;  %830 = vmatmul.mubr.f32.gmra.mrb[6].mxu0 %v1326_v15 }
 0x114   : > { %v510_v43 = vpop.f32.mrb[0].mxu1  ;;  %v810_v44 = vpop.f32.mrb[0].mxu0 }
 0x115   : > { %v980_v45 = vadd.f32 %v810_v44, %v510_v43  ;;  %v512_v46 = vpop.f32.mrb[1].mxu1  ;;  %v812_v47 = vpop.f32.mrb[1].mxu0 }
 0x116   : > { %v981_v48 = vadd.f32 %v812_v47, %v512_v46 }
 0x117   : > { %v836_v49 = vmax.f32 %v980_v45, 1e-06 }
 0x118   : > { %v837_v50 = vmax.f32 %v981_v48, 1e-06  ;;  %v518_v51 = vpop.f32.mrb[2].mxu1  ;;  %v817_v52 = vpop.f32.mrb[2].mxu0 }
 0x119   : > { %v844_v53 = vmul.f32 %v836_v49, %v836_v49  ;;  %v982_v54 = vadd.f32 %v817_v52, %v518_v51  ;;  %v520_v55 = vpop.f32.mrb[3].mxu1  ;;  %v819_v56 = vpop.f32.mrb[3].mxu0 }
 0x11a   : > { %v845_v57 = vmul.f32 %v837_v50, %v837_v50  ;;  %v983_v58 = vadd.f32 %v819_v56, %v520_v55 }
 0x11b   : > { %v838_v59 = vmax.f32 %v982_v54, 1e-06  ;;  %v852_v60 = vmul.f32 %v844_v53, %v836_v49 }
 0x11c   : > { %v839_v61 = vmax.f32 %v983_v58, 1e-06  ;;  %v526_v62 = vpop.f32.mrb[4].mxu1  ;;  %v824_v63 = vpop.f32.mrb[4].mxu0  ;;  %v853_v0 = vmul.f32 %v845_v57, %v837_v50 }
 0x11d   : > { %v846_v1 = vmul.f32 %v838_v59, %v838_v59  ;;  %v984_v2 = vadd.f32 %v824_v63, %v526_v62  ;;  %v528_v3 = vpop.f32.mrb[5].mxu1  ;;  %v826_v4 = vpop.f32.mrb[5].mxu0 }
 0x11e   : > { %v847_v5 = vmul.f32 %v839_v61, %v839_v61  ;;  %v985_v6 = vadd.f32 %v826_v4, %v528_v3  ;;  %v860_v7 = vadd.f32 %v853_v0, %v852_v60  ;;  %v200_v3 = vld [vmem:[%s1471_s2 + $0x8] sm:$0xff] }
 0x11f   : > { %v854_v8 = vmul.f32 %v846_v1, %v838_v59  ;;  %v840_v9 = vmax.f32 %v984_v2, 1e-06 }
 0x120   : > { %v855_v10 = vmul.f32 %v847_v5, %v839_v61  ;;  %v841_v11 = vmax.f32 %v985_v6, 1e-06  ;;  %v831_v12 = vpop.f32.mrb[6].mxu0  ;;  %861 = vadd.xlane.f32.xlu0 %v860_v7  ;;  %v534_v13 = vpop.f32.mrb[6].mxu1 }
 0x121   : > { %v848_v14 = vmul.f32 %v840_v9, %v840_v9  ;;  %v986_v15 = vadd.f32 %v831_v12, %v534_v13  ;;  %v536_v16 = vpop.f32.mrb[7].mxu1  ;;  %v833_v17 = vpop.f32.mrb[7].mxu0 }
 0x122   : > { %v849_v18 = vmul.f32 %v841_v11, %v841_v11  ;;  %v987_v19 = vadd.f32 %v833_v17, %v536_v16  ;;  %v863_v20 = vadd.f32 %v855_v10, %v854_v8  ;;  %v199_v8 = vld [vmem:[%s1471_s2] sm:$0xff]  ;;  %v201_v10 = vld [vmem:[%s1471_s2 + $0x10] sm:$0xff] }
 0x123   : > { %v842_v21 = vmax.f32 %v986_v15, 1e-06  ;;  %v856_v22 = vmul.f32 %v848_v14, %v840_v9 }
 0x124   : > { %v843_v23 = vmax.f32 %v987_v19, 1e-06  ;;  %864 = vadd.xlane.f32.xlu0 %v863_v20  ;;  %v857_v24 = vmul.f32 %v849_v18, %v841_v11 }
 0x125   : > { %v850_v25 = vmul.f32 %v842_v21, %v842_v21 }
 0x126   : > { %v851_v26 = vmul.f32 %v843_v23, %v843_v23  ;;  %v866_v27 = vadd.f32 %v857_v24, %v856_v22 }
 0x127   : > { %v858_v28 = vmul.f32 %v850_v25, %v842_v21 }
 0x128   : > { %v859_v29 = vmul.f32 %v851_v26, %v843_v23  ;;  %867 = vadd.xlane.f32.xlu1 %v866_v27  ;;  %v202_v23 = vld [vmem:[%s1471_s2 + $0x18] sm:$0xff] }
 0x12a   : > { %v869_v30 = vadd.f32 %v859_v29, %v858_v28 }
 0x12c   : > { %870 = vadd.xlane.f32.xlu1 %v869_v30 }
 0x1ad   : > { %v862_v31 = vpop.xlane.xlu0 %861 }
 0x1ae   : > { %v873_v32 = vmul.f32 0.00390625, %v862_v31 }
 0x1b0   : > { %v1022_v33 = vand.u32 2147483647, %v873_v32  ;;  %v1026_v49 = vand.u32 2147483648, %v873_v32  ;;  %vm1021_vm4 = vcmp.lt.f32.partialorder %v873_v32, 0.0  ;;  %vm1020_vm7 = vcmp.eq.f32.partialorder %v873_v32, 0.0 }
 0x1b1   : > { %v865_v34 = vpop.xlane.xlu0 %864 }
 0x1b2   : > { %1133 = vlog2.f32 %v1022_v33  ;;  %v874_v35 = vmul.f32 0.00390625, %v865_v34  ;;  %vm1030_vm2 = vweird.f32 %v1022_v33  ;;  %vm1032_vm3 = vcmp.eq.f32.partialorder %v1022_v33, 0.0 }
 0x1b3   : > { %vm1023_vm13 = vcmp.eq.f32.partialorder %v1022_v33, inf }
 0x1b4   : > { %v1040_v36 = vand.u32 2147483647, %v874_v35  ;;  %v1044_v56 = vand.u32 2147483648, %v874_v35  ;;  %vm1039_vm8 = vcmp.lt.f32.partialorder %v874_v35, 0.0  ;;  %vm1038_vm9 = vcmp.eq.f32.partialorder %v874_v35, 0.0 }
 0x1b5   : > { %v868_v37 = vpop.xlane.xlu1 %867 }
 0x1b6   : > { %v1377_v38 = vmul.f32 0.00390625, %v868_v37  ;;  %1135 = vlog2.f32 %v1040_v36  ;;  %vm1048_vm5 = vweird.f32 %v1040_v36  ;;  %vm1050_vm6 = vcmp.eq.f32.partialorder %v1040_v36, 0.0 }
 0x1b7   : > { %vm1041_vm11 = vcmp.eq.f32.partialorder %v1040_v36, inf }
 0x1b8   : > { %v1380_v39 = vand.u32 2147483647, %v1377_v38  ;;  %v1062_v60 = vand.u32 2147483648, %v1377_v38  ;;  %vm1057_vm14 = vcmp.lt.f32.partialorder %v1377_v38, 0.0  ;;  %vm1056_vm15 = vcmp.eq.f32.partialorder %v1377_v38, 0.0 }
 0x1b9   : > { %v871_v40 = vpop.xlane.xlu1 %870 }
 0x1ba   : > { %1137 = vlog2.f32 %v1380_v39  ;;  %v1383_v41 = vmul.f32 0.00390625, %v871_v40  ;;  %vm1066_vm10 = vweird.f32 %v1380_v39  ;;  %vm1068_vm12 = vcmp.eq.f32.partialorder %v1380_v39, 0.0 }
 0x1bb   : > { %vm1059_vm1 = vcmp.eq.f32.partialorder %v1380_v39, inf  ;;  %v898_v39 = vld [vmem:[%s1472_s3] sm:$0x1] }
 0x1bc   : > { %v1134_v42 = vpop.eup %1133  ;;  %v1386_v44 = vand.u32 2147483647, %v1383_v41  ;;  %v1080_v12 = vand.u32 2147483648, %v1383_v41 }
 0x1bd   : > { %v1027_v43 = vmul.f32 0.33333334, %v1134_v42 }
 0x1bf   : > { %1139 = vpow2.f32 %v1027_v43 }
 0x1c0   : > { %1141 = vlog2.f32 %v1386_v44  ;;  %v1136_v45 = vpop.eup %1135 }
 0x1c1   : > { %v1045_v46 = vmul.f32 0.33333334, %v1136_v45 }
 0x1c3   : > { %1143 = vpow2.f32 %v1045_v46 }
 0x1c4   : > { %v1138_v47 = vpop.eup %1137 }
 0x1c5   : > { %v1063_v48 = vmul.f32 0.33333334, %v1138_v47 }
 0x1c7   : > { %1145 = vpow2.f32 %v1063_v48 }
 0x1c9   : > { %v1140_v50 = vpop.eup %1139 }
 0x1ca   : > { %v1142_v51 = vpop.eup %1141  ;;  %v1029_v52 = vor.u32 %v1140_v50, %v1026_v49 }
 0x1cb   : > { %v1081_v53 = vmul.f32 0.33333334, %v1142_v51 }
 0x1cc   : > { %v1031_v54 = vsel %vm1030_vm2, %v873_v32, %v1029_v52  ;;  %vm1084_vm2 = vweird.f32 %v1386_v44 }
 0x1cd   : > { %v1034_v55 = vsel %vm1032_vm3, %v1026_v49, %v1031_v54  ;;  %1147 = vpow2.f32 %v1081_v53  ;;  %v1144_v57 = vpop.eup %1143  ;;  %vm1086_vm3 = vcmp.eq.f32.partialorder %v1386_v44, 0.0 }
 0x1ce   : > { %v1047_v58 = vor.u32 %v1144_v57, %v1044_v56  ;;  %v1035_v59 = vsel %vm1021_vm4, nan, %v1034_v55  ;;  %vm1075_vm4 = vcmp.lt.f32.partialorder %v1383_v41, 0.0 }
 0x1cf   : > { %v1036_v1 = vsel %vm1020_vm7, 0.0, %v1035_v59  ;;  %vm900_vm7 = vcmask 24576  }
 0x1d0   : > { %v1049_v62 = vsel %vm1048_vm5, %v874_v35, %v1047_v58  ;;  %v1037_v9 = vsel %vm1023_vm13, inf, %v1036_v1  ;;  %vm1074_vm5 = vcmp.eq.f32.partialorder %v1383_v41, 0.0 }
 0x1d1   : > { %v1146_v61 = vpop.eup %1145  ;;  %v1052_v63 = vsel %vm1050_vm6, %v1044_v56, %v1049_v62  ;;  %v881_v18 = vmul.f32 %v1037_v9, %v199_v8  ;;  %vm1077_vm6 = vcmp.eq.f32.partialorder %v1386_v44, inf }
 0x1d2   : > { %v1065_v0 = vor.u32 %v1146_v61, %v1062_v60  ;;  %v1053_v2 = vsel %vm1039_vm8, nan, %v1052_v63 }
 0x1d3   : > { %v1054_v4 = vsel %vm1038_vm9, 0.0, %v1053_v2  ;;  %v885_v25 = vsel %vm206_vm0, %v881_v18, 0.0 }
 0x1d4   : > { %v1067_v5 = vsel %vm1066_vm10, %v1377_v38, %v1065_v0  ;;  %v1055_v6 = vsel %vm1041_vm11, inf, %v1054_v4 }
 0x1d5   : > { %v1070_v7 = vsel %vm1068_vm12, %v1062_v60, %v1067_v5  ;;  %v882_v14 = vmul.f32 %v1055_v6, %v200_v3 }
 0x1d6   : > { %v1071_v11 = vsel %vm1057_vm14, nan, %v1070_v7 }
 0x1d7   : > { %v1148_v13 = vpop.eup %1147  ;;  %v1072_v15 = vsel %vm1056_vm15, 0.0, %v1071_v11  ;;  %v886_v21 = vsel %vm206_vm0, %v882_v14, 0.0 }
 0x1d8   : > { %v1073_v16 = vsel %vm1059_vm1, inf, %v1072_v15  ;;  %v1083_v17 = vor.u32 %v1148_v13, %v1080_v12  ;;  %v887_v28 = vadd.f32 %v886_v21, %v885_v25 }
 0x1d9   : > { %v883_v19 = vmul.f32 %v1073_v16, %v201_v10 }
 0x1da   : > { %v1085_v20 = vsel %vm1084_vm2, %v1383_v41, %v1083_v17 }
 0x1db   : > { %v1088_v22 = vsel %vm1086_vm3, %v1080_v12, %v1085_v20  ;;  %v888_v26 = vsel %vm206_vm0, %v883_v19, 0.0 }
 0x1dc   : > { %v1089_v24 = vsel %vm1075_vm4, nan, %v1088_v22  ;;  %v889_v31 = vadd.f32 %v888_v26, %v887_v28 }
 0x1dd   : > { %v1090_v27 = vsel %vm1074_vm5, 0.0, %v1089_v24 }
 0x1de   : > { %v1091_v29 = vsel %vm1077_vm6, inf, %v1090_v27 }
 0x1df   : > { %v884_v30 = vmul.f32 %v1091_v29, %v202_v23 }
 0x1e1   : > { %v890_v32 = vsel %vm206_vm0, %v884_v30, 0.0 }
 0x1e2   : > { %v891_v33 = vadd.f32 %v890_v32, %v889_v31 }
 0x1e4   : > { %v892_v34 = vrot.slane %v891_v33, 4 }
 0x1e6   : > { %v893_v35 = vadd.f32 %v892_v34, %v891_v33 }
 0x1e8   : > { %v894_v36 = vrot.slane %v893_v35, 2 }
 0x1ea   : > { %v895_v37 = vadd.f32 %v894_v36, %v893_v35 }
 0x1ec   : > { %v896_v38 = vrot.slane %v895_v37, 1 }
 0x1ee   : > { %v897_v40 = vadd.f32 %v896_v38, %v895_v37 }
 0x1f0   : > { %v899_v41 = vadd.f32 %v898_v39, %v897_v40 }
 0x1f2   : > { %901 = vst.msk [vmem:[%s189_s9] sm:$0x1] %vm900_vm7, %v899_v41 }
 0x1f3   : > { %1162 = shalt.err (!%p1159_p3)
}
 0x1f4   : > { %s1163_s27 = scalar_lea.hbm %s1427_s13, 16  ;;  %s1167_s30 = scalar_lea.hbm %s1473_s4, 32 }
 0x1f5   : > { %p1164_p4 = scmp.ne.s32.totalorder %s1427_s13, %s1163_s27  ;;  %p1168_p9 = scmp.lt.u32.totalorder %s1427_s13, %s1473_s4 }
 0x1f6   : > { %p1169_p10 = scmp.lt.u32.totalorder %s1167_s30, %s1163_s27  ;;  %p1171_p12 = scmp.lt.u32.totalorder %s1163_s27, %s1427_s13 }
 0x1f7   : > { %p1165_p7 = pnand %p1164_p4, %p1278_p5 }
 0x1f8   : > { %p1170_p11 = por %p1169_p10, %p1168_p9 }
 0x1f9   : > { %p1166_p8 = pneg %p1165_p7 }
 0x1fa   : > { %p1172_p13 = por %p1171_p12, %p1170_p11 }
 0x1fc   : > { %p1173_p0 = pnand %p1172_p13, %p1166_p8 }
 0x1fe   : > { %1176 = shalt.err (!%p1173_p0)
}
 0x1ff   : > { %1092 = dma.vmem_to_hbm [thread:$0]  (%p1278_p5), %s1429_s10, 16, %s1427_s13, %s903_s14  }
 0x200 PF: > { %p1098_p1 = scmp.ge.s32.totalorder %s1211_s18, 2  ;;  %s927_s7 = sand.u32 1, %s1199_s15  }
 0x201   : > { %s928_s8 = scalar_lea.sflag [#allocation3], %s927_s7 }
 0x202   : > { %p1095_p2 = pnand %p1098_p1, %p1282_p6 }
 0x204   : > { %1194 = dma.done.wait (!%p1095_p2), %s928_s8, 16  }
 0x205   : > { %1196 = vsyncadd (!%p1095_p2), %s928_s8, 4294967280  ;;  %p14_p3 = scmp.ge.s32.totalorder %s1265_s21, 4   ;;  %s1476_s15 = smov %s1203_s16 }
 0x206   : > { %s1477_s16 = smov %s1207_s17  ;;  %s1478_s17 = smov %s1276_s24 }
 0x207   : > { %s1479_s18 = smov %s1265_s21  ;;  %16 = sbr.rel (!%p14_p3) target bundleno = 3 (0x3), region = 71 }
 0x20e   :  { %932 = vsyncpa [#allocation3], 1 }
 0x20f   :  { %934 = vsyncpa [#allocation3 + $0x1], 1 }

</bundles_post_ra>
